<compile_context>
chip_gen: v6e
topology: v6e:2x2x1
jax: 0.10.0
libtpu: 0.0.40
codegen_flags: <defaults>
</compile_context>

<pallas_src>
import math

import jax
import jax.numpy as jnp
from jax.experimental import pallas as pl
from jax.experimental.pallas import tpu as pltpu


def jetmoe_rotary_embedding(x, seq_len, dim, base=10000.0):
    """Returns (cos, sin), each (seq_len, dim), dtype = x.dtype."""
    assert dim % 2 == 0, "rotary dim must be even"
    assert seq_len < (1 << 24), "positions must be exactly representable in f32"
    out_dtype = x.dtype
    half_dim = dim // 2

    # Exact inv_freq — same pow formula as the PyTorch module (and the ref).
    inv_freq = 1.0 / (base ** (jnp.arange(0, dim, 2, dtype=jnp.float32) / dim))

    # Lane packing: fold `pack` consecutive positions into the lane axis so the
    # packed last dim w = pack*dim is a multiple of 128 (full unmasked stores).
    pack_candidate = ((dim * 128) // math.gcd(dim, 128)) // dim   # lcm(dim,128)//dim
    pack = pack_candidate if (seq_len % pack_candidate == 0) else 1
    w = pack * dim          # packed lane width
    rows = seq_len // pack  # packed rows
    # (If pack == 1 and dim % 128 != 0, stores are masked — unavoidable here.)

    # Per-lane constants, computed once in the wrapper (2 x 4*w bytes of input).
    # Packed layout: packed[r, l] == emb_trig[r*pack + l//dim, l % dim].
    lane = jnp.arange(w, dtype=jnp.int32)
    inv_lane = inv_freq[(lane % dim) % half_dim].reshape(1, w).astype(jnp.float32)
    lane_pos = (lane // dim).astype(jnp.float32).reshape(1, w)

    # Row-tile heuristic (see header comment).
    itemsize = jnp.dtype(out_dtype).itemsize
    row_bytes = w * itemsize
    if rows <= 8 or rows * row_bytes <= 256 * 1024:
        tm = rows                                            # single grid step
    else:
        cap = max(8, (((1 << 20) // row_bytes) // 8) * 8)    # ~1 MiB per output block
        want = max(8, ((pl.cdiv(rows, 4) + 7) // 8) * 8)     # >= 4 steps (>=2 per TC on v7x)
        tm = min(cap, want)
    grid = (pl.cdiv(rows, tm),)

    def kernel(inv_ref, lpos_ref, cos_ref, sin_ref):
        i = pl.program_id(0)
        inv_l = inv_ref[...]                                     # (1, w) f32
        # Per-step (1, w) lane offset; all terms are exact integers in f32.
        base_pos = (i * (tm * pack)).astype(jnp.float32)
        off = lpos_ref[...] + base_pos                           # (1, w)
        # Per-element: iota + mul + add (exact integer positions) + one mul.
        row = jax.lax.broadcasted_iota(jnp.int32, (tm, w), 0).astype(jnp.float32)
        pos = row * jnp.float32(pack) + off                      # exact, (tm, w)
        phase = pos * inv_l                                      # single rounding
        cos_ref[...] = jnp.cos(phase).astype(cos_ref.dtype)
        sin_ref[...] = jnp.sin(phase).astype(sin_ref.dtype)

    n_elem = seq_len * dim
    cost = pl.CostEstimate(
        flops=8 * n_elem,
        transcendentals=2 * n_elem,
        bytes_accessed=2 * n_elem * itemsize + 8 * w,
    )

    cos_p, sin_p = pl.pallas_call(
        kernel,
        out_shape=(
            jax.ShapeDtypeStruct((rows, w), out_dtype),
            jax.ShapeDtypeStruct((rows, w), out_dtype),
        ),
        grid_spec=pltpu.PrefetchScalarGridSpec(
            num_scalar_prefetch=0,
            grid=grid,
            in_specs=[
                pl.BlockSpec((1, w), lambda i: (0, 0)),
                pl.BlockSpec((1, w), lambda i: (0, 0)),
            ],
            out_specs=[
                pl.BlockSpec((tm, w), lambda i: (i, 0)),
                pl.BlockSpec((tm, w), lambda i: (i, 0)),
            ],
        ),
        compiler_params=pltpu.CompilerParams(
            dimension_semantics=("parallel",)
        ),
        cost_estimate=cost,
    )(inv_lane, lane_pos)

    # Free, contiguous row-major unpacking back to (seq_len, dim):
    # packed[r, f*dim + d] == emb_trig[r*pack + f, d].
    return cos_p.reshape(seq_len, dim), sin_p.reshape(seq_len, dim)


if __name__ == "__main__":
    # Small shapes consistent with the module: head_dim=32.
    dim = 32
    seq_len = 128
    batch, heads = 2, 4

    key = jax.random.PRNGKey(0)
    # x is only used for its dtype in the original forward.
    x = jax.random.normal(key, (batch, heads, seq_len, dim), dtype=jnp.float32)

    cos, sin = jetmoe_rotary_embedding(x, seq_len=seq_len, dim=dim)
    cos = jax.block_until_ready(cos)
    sin = jax.block_until_ready(sin)

    # Pure-JAX reference (mirrors the PyTorch math).
    inv_freq = 1.0 / (10000.0 ** (jnp.arange(0, dim, 2, dtype=jnp.float32) / dim))
    t = jnp.arange(seq_len, dtype=jnp.float32)
    freqs = jnp.outer(t, inv_freq)
    emb = jnp.concatenate([freqs, freqs], axis=-1)
    cos_ref = jnp.cos(emb).astype(x.dtype)
    sin_ref = jnp.sin(emb).astype(x.dtype)

    assert cos.shape == (seq_len, dim) and sin.shape == (seq_len, dim)
    assert cos.dtype == x.dtype and sin.dtype == x.dtype
    # Phase is formed identically to the reference (exact integer positions *
    # the same inv_freq, single rounding); remaining tolerance only covers
    # possible trig-approximation differences between lowerings.
    assert jnp.allclose(cos, cos_ref, atol=1e-4)
    assert jnp.allclose(sin, sin_ref, atol=1e-4)

    print("KERNEL_OK")
</pallas_src>

<mosaic_0001>
module attributes {stable_mosaic.version = 11 : i64} {
  func.func @kernel(%arg0: i32, %arg1: memref<1x128xf32, #tpu.memory_space<vmem>>, %arg2: memref<1x128xf32, #tpu.memory_space<vmem>>, %arg3: memref<32x128xf32, #tpu.memory_space<vmem>>, %arg4: memref<32x128xf32, #tpu.memory_space<vmem>>) attributes {dimension_semantics = [#tpu.dimension_semantics<parallel>], iteration_bounds = array<i64: 1>, scalar_prefetch = 0 : i64, scratch_operands = 0 : i64, tpu.core_type = #tpu.core_type<tc>, window_params = [{pipeline_mode = #tpu.pipeline_mode<synchronous>, transform_indices = @transform_0, window_bounds = array<i64: 1, 128>}, {pipeline_mode = #tpu.pipeline_mode<synchronous>, transform_indices = @transform_1, window_bounds = array<i64: 1, 128>}, {transform_indices = @transform_2, window_bounds = array<i64: 32, 128>}, {transform_indices = @transform_3, window_bounds = array<i64: 32, 128>}]} {
    %c0 = arith.constant 0 : index
    %c0_0 = arith.constant 0 : index
    %0 = vector.load %arg1[%c0, %c0_0] : memref<1x128xf32, #tpu.memory_space<vmem>>, vector<1x128xf32>
    %c128_i32 = arith.constant 128 : i32
    %1 = arith.muli %arg0, %c128_i32 : i32
    %2 = arith.sitofp %1 : i32 to f32
    %c0_1 = arith.constant 0 : index
    %c0_2 = arith.constant 0 : index
    %3 = vector.load %arg2[%c0_1, %c0_2] : memref<1x128xf32, #tpu.memory_space<vmem>>, vector<1x128xf32>
    %4 = vector.broadcast %2 : f32 to vector<1x128xf32>
    %5 = arith.addf %3, %4 : vector<1x128xf32>
    %6 = tpu.iota {dimensions = array<i32: 0>} : vector<32x128xi32>
    %7 = arith.sitofp %6 : vector<32x128xi32> to vector<32x128xf32>
    %cst = arith.constant 4.000000e+00 : f32
    %8 = vector.broadcast %cst : f32 to vector<32x128xf32>
    %9 = arith.mulf %7, %8 : vector<32x128xf32>
    %10 = vector.broadcast %5 : vector<1x128xf32> to vector<32x128xf32>
    %11 = arith.addf %9, %10 : vector<32x128xf32>
    %12 = vector.broadcast %0 : vector<1x128xf32> to vector<32x128xf32>
    %13 = arith.mulf %11, %12 : vector<32x128xf32>
    %14 = math.cos %13 : vector<32x128xf32>
    %c0_3 = arith.constant 0 : index
    %c0_4 = arith.constant 0 : index
    %15 = vector.load %arg3[%c0_3, %c0_4] : memref<32x128xf32, #tpu.memory_space<vmem>>, vector<32x128xf32>
    tpu.vector_store %arg3[%c0_3, %c0_4], %14 {strides = array<i32>} : memref<32x128xf32, #tpu.memory_space<vmem>>, vector<32x128xf32>,
    %16 = math.sin %13 : vector<32x128xf32>
    %c0_5 = arith.constant 0 : index
    %c0_6 = arith.constant 0 : index
    %17 = vector.load %arg4[%c0_5, %c0_6] : memref<32x128xf32, #tpu.memory_space<vmem>>, vector<32x128xf32>
    tpu.vector_store %arg4[%c0_5, %c0_6], %16 {strides = array<i32>} : memref<32x128xf32, #tpu.memory_space<vmem>>, vector<32x128xf32>,
    return
  }
  func.func @transform_0(%arg0: i32) -> (i32, i32) {
    %c0_i32 = arith.constant 0 : i32
    %c0_i32_0 = arith.constant 0 : i32
    %c0_i32_1 = arith.constant 0 : i32
    return %c0_i32, %c0_i32_0 : i32, i32
  }
  func.func @transform_1(%arg0: i32) -> (i32, i32) {
    %c0_i32 = arith.constant 0 : i32
    %c0_i32_0 = arith.constant 0 : i32
    %c0_i32_1 = arith.constant 0 : i32
    return %c0_i32, %c0_i32_0 : i32, i32
  }
  func.func @transform_2(%arg0: i32) -> (i32, i32) {
    %c0_i32 = arith.constant 0 : i32
    %c0_i32_0 = arith.constant 0 : i32
    return %arg0, %c0_i32 : i32, i32
  }
  func.func @transform_3(%arg0: i32) -> (i32, i32) {
    %c0_i32 = arith.constant 0 : i32
    %c0_i32_0 = arith.constant 0 : i32
    return %arg0, %c0_i32 : i32, i32
  }
}

</mosaic_0001>

<bundles_post_ra>
// kernel: tpu_custom_call.1
= control target key start
LH: loop header
LB: loop body
LE: loop exit
PB: predicated region body
PF: predicated region fallthrough
CT: control target
= control target key end

     0   :  { %9 = vsyncpa [#allocation3], 0  ;;  %s1445_s0 = inlined_call_operand.hbm [shape: f32[1,128], index: 0, kind: input, shape index: {}]   ;;  %s1446_s1 = inlined_call_operand.vmem [shape: f32[1,128], index: 1, kind: input, shape index: {}]   ;;  %s1447_s2 = inlined_call_operand.hbm [shape: f32[32,128], index: 2, kind: output, shape index: {0}]   ;;  %s1448_s3 = inlined_call_operand.hbm [shape: f32[32,128], index: 3, kind: output, shape index: {1}]  }
   0x1   :  { %10 = vsyncpa [#allocation4], 0 }
   0x2   :  { %11 = vsyncpa [#allocation7], 0  ;;  %s1078_s12 = smov [#allocation2]  }
   0x3   :  { %s18_s13 = sshll.u32 %s1078_s12, 4  ;;  %s19_s13 = int_to_ptr.vmem [resolvable:$true] %s18_s13 }
   0x4   :  { %s1020_s14 = scalar_lea.vmem %s19_s13, 16  ;;  %s1024_s15 = scalar_lea.vmem %s19_s13, 32 }
   0x5   :  { %p1021_p0 = scmp.ne.s32.totalorder %s19_s13, %s1020_s14  ;;  %p1025_p1 = scmp.lt.s32.totalorder %s19_s13, %s19_s13 }
   0x6   :  { %p1026_p2 = scmp.lt.s32.totalorder %s1024_s15, %s1020_s14 }
   0x8   :  { %p1027_p3 = por %p1026_p2, %p1025_p1 }
   0xa   :  { %p1028_p4 = pnand %p1027_p3, %p1021_p0 }
   0xc   :  { %1031 = shalt.err (!%p1028_p4)
}
   0xd   :  { %21 = dma.hbm_to_vmem [thread:$0]  %s1445_s0, 16, %s19_s13, [#allocation3]  }
   0xe   :  { %1072 = dma.done.wait [#allocation3], 16  }
   0xf   :  { %1073 = vsyncadd [#allocation3], 4294967280  ;;  %v33_v0 = vlaneseq  ;;  %v1112_v8 = vld [vmem:[#allocation2] ss:$0 sm:$0xff]  ;;  %v1079_v45 = vmov 683565275  }
  0x10   :  { %v1117_v9 = vld [vmem:[%s1446_s1] ss:$0 sm:$0xff]  ;;  %v1080_v47 = vmov 2475754826   ;;  %v1081_v49 = vmov 2131351028  }
  0x11   :  { %v34_v1 = vshrl.u32 %v33_v0, 7  ;;  %v1082_v51 = vmov 2102212464   ;;  %v1083_v53 = vmov 920167782   ;;  %s1085_s0 = smov [#allocation5]  }
  0x12   :  { %v1084_v60 = vmov 1326507024   ;;  %s907_s1 = sshll.u32 %s1085_s0, 4  ;;  %s1086_s20 = smov [#allocation6]   ;;  %s908_s1 = int_to_ptr.vmem [resolvable:$true] %s907_s1 }
  0x13   :  { %v38_v2 = vcvt.s32.f32 %v34_v1  ;;  %v35_v3 = vadd.s32 8, %v34_v1  ;;  %v36_v4 = vadd.s32 16, %v34_v1  ;;  %v37_v21 = vadd.s32 24, %v34_v1  ;;  %s919_s21 = sshll.u32 %s1086_s20, 4  ;;  %s1032_s22 = scalar_lea.vmem %s908_s1, 512  ;;  %s920_s21 = int_to_ptr.vmem [resolvable:$true] %s919_s21 }
  0x14   :  { %p1033_p5 = scmp.ne.s32.totalorder %s908_s1, %s1032_s22  ;;  %p1037_p6 = scmp.lt.s32.totalorder %s908_s1, %s908_s1 }
  0x15   :  { %v42_v5 = vmul.f32 4.0, %v38_v2  ;;  %v39_v6 = vcvt.s32.f32 %v35_v3  ;;  %v40_v7 = vcvt.s32.f32 %v36_v4  ;;  %v41_v30 = vcvt.s32.f32 %v37_v21  ;;  %p1038_p7 = scmp.lt.s32.totalorder %s1032_s22, %s1032_s22 }
  0x17   :  { %v52_v10 = vadd.f32 %v1117_v9, %v42_v5  ;;  %v43_v11 = vmul.f32 4.0, %v39_v6  ;;  %v44_v12 = vmul.f32 4.0, %v40_v7  ;;  %v1141_v40 = vmul.f32 4.0, %v41_v30  ;;  %p1039_p8 = por %p1038_p7, %p1037_p6 }
  0x19   :  { %v1121_v13 = vmul.f32 %v1112_v8, %v52_v10  ;;  %v53_v14 = vadd.f32 %v1117_v9, %v43_v11  ;;  %v54_v15 = vadd.f32 %v1117_v9, %v44_v12  ;;  %p1040_p9 = pnand %p1039_p8, %p1033_p5 }
  0x1b   :  { %v66_v16 = vand.u32 2147483647, %v1121_v13  ;;  %v69_v17 = vand.u32 2139095040, %v1121_v13  ;;  %v1128_v18 = vmul.f32 %v1112_v8, %v53_v14  ;;  %v1131_v19 = vmul.f32 %v1112_v8, %v54_v15 }
  0x1d   :  { %v70_v20 = vshrl.u32 %v69_v17, 23  ;;  %v73_v22 = vand.u32 8388607, %v66_v16  ;;  %v169_v23 = vand.u32 2147483647, %v1128_v18  ;;  %v172_v24 = vand.u32 2139095040, %v1128_v18 }
  0x1e   :  { %v275_v28 = vand.u32 2139095040, %v1131_v19  ;;  %v272_v39 = vand.u32 2147483647, %v1131_v19 }
  0x1f   :  { %v937_v25 = vadd.s32 4294967169, %v70_v20  ;;  %v173_v26 = vshrl.u32 %v172_v24, 23  ;;  %v176_v27 = vand.u32 8388607, %v169_v23  ;;  %v74_v31 = vor.u32 8388608, %v73_v22 }
  0x20   :  { %v276_v34 = vshrl.u32 %v275_v28, 23 }
  0x21   :  { %v76_v29 = vadd.s32 1, %v937_v25  ;;  %v941_v32 = vadd.s32 4294967169, %v173_v26  ;;  %v177_v33 = vor.u32 8388608, %v176_v27  ;;  %v1143_v41 = vshll.u32 %v74_v31, 8 }
  0x22   :  { %v1147_v43 = vadd.s32 4294967169, %v276_v34 }
  0x23   :  { %vm77_vm0 = vcmp.gt.s32.totalorder %v76_v29, 0  ;;  %v179_v36 = vadd.s32 1, %v941_v32  ;;  %v1145_v42 = vshll.u32 %v177_v33, 8 }
  0x24   :  { %v78_v35 = vsel %vm77_vm0, %v76_v29, 0 }
  0x25   :  { %v79_v37 = vshrl.u32 %v78_v35, 5  ;;  %v80_v38 = vand.u32 31, %v78_v35  ;;  %vm180_vm1 = vcmp.gt.s32.totalorder %v179_v36, 0 }
  0x26   :  { %v181_v1 = vsel %vm180_vm1, %v179_v36, 0 }
  0x27   :  { %v81_v44 = vsub.s32 32, %v80_v38  ;;  %v83_v46 = vshll.u32 %v1079_v45, %v80_v38  ;;  %v86_v48 = vshll.u32 %v1080_v47, %v80_v38  ;;  %v89_v50 = vshll.u32 %v1081_v49, %v80_v38 }
  0x28   :  { %v92_v52 = vshll.u32 %v1082_v51, %v80_v38  ;;  %v95_v54 = vshll.u32 %v1083_v53, %v80_v38  ;;  %vm98_vm2 = vcmp.lt.s32.totalorder %v79_v37, 1  ;;  %vm99_vm3 = vcmp.lt.s32.totalorder %v79_v37, 2 }
  0x29   :  { %v82_v55 = vshrl.u32 %v1079_v45, %v81_v44  ;;  %v84_v56 = vshrl.u32 %v1080_v47, %v81_v44  ;;  %v87_v57 = vshrl.u32 %v1081_v49, %v81_v44  ;;  %v90_v58 = vshrl.u32 %v1082_v51, %v81_v44 }
  0x2a   :  { %v93_v59 = vshrl.u32 %v1083_v53, %v81_v44  ;;  %v96_v61 = vshrl.u32 %v1084_v60, %v81_v44  ;;  %vm100_vm4 = vcmp.lt.s32.totalorder %v79_v37, 3  ;;  %vm101_vm5 = vcmp.lt.s32.totalorder %v79_v37, 4 }
  0x2b   :  { %v85_v62 = vor.u32 %v84_v56, %v83_v46  ;;  %v88_v63 = vor.u32 %v87_v57, %v86_v48  ;;  %v91_v0 = vor.u32 %v90_v58, %v89_v50  ;;  %v182_v4 = vshrl.u32 %v181_v1, 5 }
  0x2c   :  { %v94_v2 = vor.u32 %v93_v59, %v92_v52  ;;  %v97_v3 = vor.u32 %v96_v61, %v95_v54  ;;  %v183_v5 = vand.u32 31, %v181_v1 }
  0x2d   :  { %v102_v6 = vsel %vm98_vm2, %v82_v55, %v85_v62  ;;  %v103_v7 = vsel %vm101_vm5, %v91_v0, 2102212464  ;;  %v106_v10 = vsel %vm98_vm2, %v85_v62, %v88_v63  ;;  %v110_v11 = vsel %vm98_vm2, %v88_v63, %v91_v0 }
  0x2e   :  { %v104_v12 = vsel %vm100_vm4, %v88_v63, %v103_v7  ;;  %v107_v14 = vsel %vm101_vm5, %v94_v2, 920167782  ;;  %v111_v15 = vsel %vm101_vm5, %v97_v3, 1326507024  ;;  %v184_v17 = vsub.s32 32, %v183_v5 }
  0x2f   :  { %v105_v20 = vsel %vm99_vm3, %v102_v6, %v104_v12  ;;  %v108_v21 = vsel %vm100_vm4, %v91_v0, %v107_v14  ;;  %v112_v22 = vsel %vm100_vm4, %v94_v2, %v111_v15  ;;  %v186_v24 = vshll.u32 %v1079_v45, %v183_v5 }
  0x30   :  { %v109_v25 = vsel %vm99_vm3, %v106_v10, %v108_v21  ;;  %v113_v26 = vsel %vm99_vm3, %v110_v11, %v112_v22  ;;  %v121_v27 = vmul.u32 %v1143_v41, %v105_v20  ;;  %v185_v28 = vshrl.u32 %v1079_v45, %v184_v17 }
  0x31   :  { %v1174_v29 = vmul.u32.u64.low %v1143_v41, %v113_v26  ;;  %v1175_v30 = vmul.u32.u64.high %v1143_v41, %v113_v26, %v1174_v29  ;;  %v1178_v31 = vmul.u32.u64.low %v1143_v41, %v109_v25  ;;  %v1179_v32 = vmul.u32.u64.high %v1143_v41, %v109_v25, %v1178_v31 }
  0x32   :  { %v187_v33 = vshrl.u32 %v1080_v47, %v184_v17  ;;  %v189_v34 = vshll.u32 %v1080_v47, %v183_v5  ;;  %v190_v35 = vshrl.u32 %v1081_v49, %v184_v17  ;;  %v192_v36 = vshll.u32 %v1081_v49, %v183_v5 }
  0x33   :  { %v193_v37 = vshrl.u32 %v1082_v51, %v184_v17  ;;  %v195_v38 = vshll.u32 %v1082_v51, %v183_v5  ;;  %v196_v44 = vshrl.u32 %v1083_v53, %v184_v17  ;;  %v198_v46 = vshll.u32 %v1083_v53, %v183_v5 }
  0x34   :  { %v188_v48 = vor.u32 %v187_v33, %v186_v24  ;;  %v191_v41 = vor.u32 %v190_v35, %v189_v34  ;;  %v199_v50 = vshrl.u32 %v1084_v60, %v184_v17  ;;  %vm201_vm6 = vcmp.lt.s32.totalorder %v182_v4, 1 }
  0x35   :  { %vm123_vm7 = vc.u32 %v1175_v30, %v1178_v31  ;;  %v124_v52 = vadd.s32 1, %v1179_v32  ;;  %v194_v54 = vor.u32 %v193_v37, %v192_v36  ;;  %v282_v55 = vadd.s32 1, %v1147_v43 }
  0x36   :  { %v197_v56 = vor.u32 %v196_v44, %v195_v38  ;;  %v200_v57 = vor.u32 %v199_v50, %v198_v46  ;;  %vm202_vm8 = vcmp.lt.s32.totalorder %v182_v4, 2  ;;  %vm203_vm9 = vcmp.lt.s32.totalorder %v182_v4, 3 }
  0x37   :  { %v125_v58 = vsel %vm123_vm7, %v124_v52, %v1179_v32  ;;  %vm204_vm10 = vcmp.lt.s32.totalorder %v182_v4, 4  ;;  %v205_v59 = vsel %vm201_vm6, %v185_v28, %v188_v48  ;;  %v209_v61 = vsel %vm201_vm6, %v188_v48, %v191_v41 }
  0x38   :  { %v126_v62 = vadd.s32 %v125_v58, %v121_v27  ;;  %v206_v63 = vsel %vm204_vm10, %v194_v54, 2102212464  ;;  %v210_v0 = vsel %vm204_vm10, %v197_v56, 920167782  ;;  %v213_v1 = vsel %vm201_vm6, %v191_v41, %v194_v54 }
  0x39   :  { %v207_v2 = vsel %vm203_vm9, %v191_v41, %v206_v63  ;;  %v211_v3 = vsel %vm203_vm9, %v194_v54, %v210_v0  ;;  %v214_v5 = vsel %vm204_vm10, %v200_v57, 1326507024  ;;  %vm283_vm11 = vcmp.gt.s32.totalorder %v282_v55, 0 }
  0x3a   :  { %v127_v43 = vadd.s32 536870912, %v126_v62  ;;  %v212_v6 = vsel %vm202_vm8, %v209_v61, %v211_v3  ;;  %v215_v7 = vsel %vm203_vm9, %v197_v56, %v214_v5  ;;  %v279_v10 = vand.u32 8388607, %v272_v39 }
  0x3b   :  { %v208_v11 = vsel %vm202_vm8, %v205_v59, %v207_v2  ;;  %v216_v12 = vsel %vm202_vm8, %v213_v1, %v215_v7  ;;  %v1205_v14 = vmul.u32.u64.low %v1145_v42, %v212_v6  ;;  %v1206_v15 = vmul.u32.u64.high %v1145_v42, %v212_v6, %v1205_v14 }
  0x3c   :  { %v1209_v17 = vshrl.u32 %v127_v43, 30  ;;  %v1212_v20 = vmul.u32.u64.low %v1145_v42, %v216_v12  ;;  %v1213_v21 = vmul.u32.u64.high %v1145_v42, %v216_v12, %v1212_v20  ;;  %v284_v22 = vsel %vm283_vm11, %v282_v55, 0 }
  0x3d   :  { %v286_v24 = vand.u32 31, %v284_v22  ;;  %v55_v25 = vadd.f32 %v1117_v9, %v1141_v40  ;;  %v224_v4 = vmul.u32 %v1145_v42, %v208_v11  ;;  %v227_v27 = vadd.s32 1, %v1206_v15 }
  0x3e   :  { %v129_v26 = vshll.u32 %v1209_v17, 30  ;;  %vm226_vm12 = vc.u32 %v1213_v21, %v1205_v14  ;;  %v280_v32 = vor.u32 8388608, %v279_v10  ;;  %v285_v41 = vshrl.u32 %v284_v22, 5 }
  0x3f   :  { %v287_v28 = vsub.s32 32, %v286_v24  ;;  %v228_v33 = vsel %vm226_vm12, %v227_v27, %v1206_v15  ;;  %v289_v34 = vshll.u32 %v1079_v45, %v286_v24  ;;  %v1227_v35 = vmul.f32 %v1112_v8, %v55_v25 }
  0x40   :  { %v1220_v29 = vsub.s32 %v126_v62, %v129_v26  ;;  %v229_v40 = vadd.s32 %v228_v33, %v224_v4  ;;  %v292_v36 = vshll.u32 %v1080_v47, %v286_v24  ;;  %v295_v38 = vshll.u32 %v1081_v49, %v286_v24 }
  0x41   :  { %v290_v42 = vshrl.u32 %v1080_v47, %v287_v28  ;;  %v293_v37 = vshrl.u32 %v1081_v49, %v287_v28  ;;  %v296_v44 = vshrl.u32 %v1082_v51, %v287_v28  ;;  %v298_v46 = vshll.u32 %v1082_v51, %v286_v24 }
  0x42   :  { %v132_v9 = vsub.s32 0, %v1220_v29  ;;  %v1237_v8 = vshll.u32 %v280_v32, 8  ;;  %v375_v50 = vand.u32 2147483647, %v1227_v35  ;;  %v230_v52 = vadd.s32 536870912, %v229_v40 }
  0x43   :  { %v288_v54 = vshrl.u32 %v1079_v45, %v287_v28  ;;  %v299_v55 = vshrl.u32 %v1083_v53, %v287_v28  ;;  %v378_v56 = vand.u32 2139095040, %v1227_v35  ;;  %v291_v58 = vor.u32 %v290_v42, %v289_v34 }
  0x44   :  { %v938_v48 = vmin.u32 %v132_v9, %v1220_v29  ;;  %v301_v59 = vshll.u32 %v1083_v53, %v286_v24  ;;  %v302_v61 = vshrl.u32 %v1084_v60, %v287_v28  ;;  %v1245_v62 = vshrl.u32 %v230_v52, 30 }
  0x45   :  { %v294_v63 = vor.u32 %v293_v37, %v292_v36  ;;  %v297_v0 = vor.u32 %v296_v44, %v295_v38  ;;  %v300_v1 = vor.u32 %v299_v55, %v298_v46  ;;  %v122_v2 = vadd.s32 %v1178_v31, %v1175_v30 }
  0x46   :  { %v134_v57 = vclz %v938_v48  ;;  %vm304_vm13 = vcmp.lt.s32.totalorder %v285_v41, 1  ;;  %vm307_vm14 = vcmp.lt.s32.totalorder %v285_v41, 4  ;;  %v232_v5 = vshll.u32 %v1245_v62, 30 }
  0x47   :  { %v303_v43 = vor.u32 %v302_v61, %v301_v59  ;;  %v309_v6 = vsel %vm307_vm14, %v297_v0, 2102212464  ;;  %v379_v7 = vshrl.u32 %v378_v56, 23  ;;  %vm305_vm0 = vcmp.lt.s32.totalorder %v285_v41, 2 }
  0x48   :  { %v939_v3 = vadd.s32 4294967294, %v134_v57  ;;  %vm306_vm1 = vcmp.lt.s32.totalorder %v285_v41, 3  ;;  %v313_v10 = vsel %vm307_vm14, %v300_v1, 920167782  ;;  %vm68_vm2 = vcmp.lt.s32.totalorder %v1121_v13, 0 }
  0x49   :  { %v1253_v12 = vsub.s32 %v229_v40, %v232_v5  ;;  %v308_v30 = vsel %vm304_vm13, %v288_v54, %v291_v58  ;;  %v312_v31 = vsel %vm304_vm13, %v291_v58, %v294_v63  ;;  %v310_v24 = vsel %vm306_vm1, %v294_v63, %v309_v6 }
  0x4a   :  { %vm940_vm15 = vcmp.lt.s32.totalorder %v939_v3, 0  ;;  %v314_v26 = vsel %vm306_vm1, %v297_v0, %v313_v10  ;;  %v316_v4 = vsel %vm304_vm13, %v294_v63, %v297_v0  ;;  %v317_v27 = vsel %vm307_vm14, %v303_v43, 1326507024 }
  0x4b   :  { %v137_v11 = vsel %vm940_vm15, 0, %v939_v3  ;;  %v235_v25 = vsub.s32 0, %v1253_v12  ;;  %vm1265_vm3 = vcmp.le.f32.partialorder %v66_v16, 0.7853982  ;;  %v152_v34 = vsub.s32 4, %v1209_v17 }
  0x4c   :  { %v138_v15 = vsub.s32 32, %v137_v11  ;;  %v139_v20 = vshll.u32 %v1220_v29, %v137_v11  ;;  %v142_v22 = vsub.s32 4294967266, %v137_v11  ;;  %v318_v29 = vsel %vm306_vm1, %v300_v1, %v317_v27 }
  0x4d   :  { %v942_v9 = vmin.u32 %v235_v25, %v1253_v12  ;;  %v315_v40 = vsel %vm305_vm0, %v312_v31, %v314_v26  ;;  %v1275_v42 = vand.u32 8388607, %v375_v50  ;;  %v311_v16 = vsel %vm305_vm0, %v308_v30, %v310_v24 }
  0x4e   :  { %v140_v32 = vshrl.u32 %v122_v2, %v138_v15  ;;  %v143_v33 = vadd.s32 127, %v142_v22  ;;  %v319_v38 = vsel %vm305_vm0, %v316_v4, %v318_v29  ;;  %v949_v52 = vadd.s32 4294967169, %v379_v7 }
  0x4f   :  { %v237_v44 = vclz %v942_v9  ;;  %v1280_v46 = vmul.u32.u64.low %v1237_v8, %v319_v38  ;;  %v1281_v48 = vmul.u32.u64.high %v1237_v8, %v319_v38, %v1280_v46  ;;  %vm171_vm4 = vcmp.lt.s32.totalorder %v1128_v18, 0 }
  0x50   :  { %v141_v36 = vor.u32 %v140_v32, %v139_v20  ;;  %v144_v37 = vshll.u32 %v143_v33, 23  ;;  %v1284_v56 = vmul.u32.u64.low %v1237_v8, %v315_v40  ;;  %v1285_v57 = vmul.u32.u64.high %v1237_v8, %v315_v40, %v1284_v56 }
  0x51   :  { %v943_v58 = vadd.s32 4294967294, %v237_v44  ;;  %v383_v59 = vor.u32 8388608, %v1275_v42  ;;  %v385_v41 = vadd.s32 1, %v949_v52  ;;  %v153_v63 = vsel %vm68_vm2, %v152_v34, %v1209_v17 }
  0x52   :  { %v145_v54 = vor.u32 4788187, %v144_v37  ;;  %v148_v55 = vcvt.s32.f32 %v141_v36  ;;  %v225_v0 = vadd.s32 %v1205_v14, %v1213_v21  ;;  %v255_v1 = vsub.s32 4, %v1245_v62 }
  0x53   :  { %vm1298_vm5 = vcmp.le.f32.partialorder %v169_v23, 0.7853982  ;;  %vm944_vm6 = vcmp.lt.s32.totalorder %v943_v58, 0  ;;  %v327_v3 = vmul.u32 %v1237_v8, %v311_v16  ;;  %vm329_vm7 = vc.u32 %v1281_v48, %v1284_v56 }
  0x54   :  { %v146_v61 = vand.u32 2147483647, %v145_v54  ;;  %vm386_vm8 = vcmp.gt.s32.totalorder %v385_v41, 0  ;;  %v240_v17 = vsel %vm944_vm6, 0, %v943_v58  ;;  %v330_v43 = vadd.s32 1, %v1285_v57 }
  0x55   :  { %v387_v14 = vsel %vm386_vm8, %v385_v41, 0  ;;  %v155_v21 = vsel %vm1265_vm3, 0, %v153_v63  ;;  %v241_v6 = vsub.s32 32, %v240_v17  ;;  %v242_v23 = vshll.u32 %v1253_v12, %v240_v17 }
  0x56   :  { %v149_v5 = vmul.f32 %v148_v55, %v146_v61  ;;  %v245_v7 = vsub.s32 4294967266, %v240_v17  ;;  %v1309_v11 = vand.u32 3, %v155_v21  ;;  %v331_v8 = vsel %vm329_vm7, %v330_v43, %v1285_v57 }
  0x57   :  { %v389_v30 = vand.u32 31, %v387_v14  ;;  %v243_v31 = vshrl.u32 %v225_v0, %v241_v6  ;;  %v256_v20 = vsel %vm171_vm4, %v255_v1, %v1245_v62  ;;  %v332_v22 = vadd.s32 %v331_v8, %v327_v3 }
  0x58   :  { %v150_v10 = vxor.u32 2147483648, %v149_v5  ;;  %v246_v15 = vadd.s32 127, %v245_v7  ;;  %v1317_v25 = vshrl.u32 %v387_v14, 5  ;;  %v1330_v37 = vsel %vm1298_vm5, 0, %v256_v20 }
  0x59   :  { %v390_v12 = vsub.s32 32, %v389_v30  ;;  %v392_v26 = vshll.u32 %v1079_v45, %v389_v30  ;;  %v244_v27 = vor.u32 %v243_v31, %v242_v23  ;;  %v333_v33 = vadd.s32 536870912, %v332_v22 }
  0x5a   :  { %v151_v24 = vsel %vm68_vm2, %v150_v10, %v149_v5  ;;  %v247_v32 = vshll.u32 %v246_v15, 23  ;;  %v395_v62 = vshll.u32 %v1080_v47, %v389_v30  ;;  %v398_v16 = vshll.u32 %v1081_v49, %v389_v30 }
  0x5b   :  { %v154_v4 = vsel %vm1265_vm3, %v1121_v13, %v151_v24  ;;  %v393_v29 = vshrl.u32 %v1080_v47, %v390_v12  ;;  %v396_v34 = vshrl.u32 %v1081_v49, %v390_v12  ;;  %v251_v40 = vcvt.s32.f32 %v244_v27 }
  0x5c   :  { %996 = vcosq.f32 %v154_v4  ;;  %v248_v9 = vor.u32 4788187, %v247_v32  ;;  %v1326_v36 = vshrl.u32 %v333_v33, 30  ;;  %v391_v28 = vshrl.u32 %v1079_v45, %v390_v12 }
  0x5d   :  { %998 = vsinq.f32 %v154_v4  ;;  %v399_v38 = vshrl.u32 %v1082_v51, %v390_v12  ;;  %v394_v46 = vor.u32 %v393_v29, %v392_v26  ;;  %v401_v52 = vshll.u32 %v1082_v51, %v389_v30 }
  0x5e   :  { %v249_v44 = vand.u32 2147483647, %v248_v9  ;;  %v335_v47 = vshll.u32 %v1326_v36, 30  ;;  %v397_v54 = vor.u32 %v396_v34, %v395_v62  ;;  %v402_v55 = vshrl.u32 %v1083_v53, %v390_v12 }
  0x5f   :  { %v404_v57 = vshll.u32 %v1083_v53, %v389_v30  ;;  %v405_v58 = vshrl.u32 %v1084_v60, %v390_v12  ;;  %vm164_vm9 = vcmp.eq.s32.totalorder %v1309_v11, 2  ;;  %vm407_vm10 = vcmp.lt.s32.totalorder %v1317_v25, 1 }
  0x60   :  { %v252_v45 = vmul.f32 %v251_v40, %v249_v44  ;;  %v1341_v41 = vsub.s32 %v332_v22, %v335_v47  ;;  %v575_v49 = vadd.s32 3, %v155_v21  ;;  %vm161_vm11 = vcmp.eq.s32.totalorder %v1309_v11, 0 }
  0x61   :  { %v400_v61 = vor.u32 %v399_v38, %v398_v16  ;;  %v403_v63 = vor.u32 %v402_v55, %v401_v52  ;;  %v406_v51 = vor.u32 %v405_v58, %v404_v57  ;;  %vm408_vm12 = vcmp.lt.s32.totalorder %v1317_v25, 2 }
  0x62   :  { %vm160_vm13 = vcmp.lt.s32.totalorder %v1309_v11, 2  ;;  %v253_v53 = vxor.u32 2147483648, %v252_v45  ;;  %v338_v60 = vsub.s32 0, %v1341_v41  ;;  %vm409_vm14 = vcmp.lt.s32.totalorder %v1317_v25, 3 }
  0x63   :  { %vm410_vm15 = vcmp.lt.s32.totalorder %v1317_v25, 4  ;;  %vm158_vm0 = vweird.f32 %v1121_v13  ;;  %v411_v0 = vsel %vm407_vm10, %v391_v28, %v394_v46  ;;  %v415_v3 = vsel %vm407_vm10, %v394_v46, %v397_v54 }
  0x64   :  { %v412_v1 = vsel %vm410_vm15, %v400_v61, 2102212464  ;;  %v416_v5 = vsel %vm410_vm15, %v403_v63, 920167782  ;;  %v254_v17 = vsel %vm171_vm4, %v253_v53, %v252_v45  ;;  %v946_v43 = vmin.u32 %v338_v60, %v1341_v41 }
  0x65   :  { %v423_v14 = vshll.u32 %v383_v59, 8  ;;  %v679_v21 = vadd.s32 3, %v1330_v37  ;;  %v257_v6 = vsel %vm1298_vm5, %v1128_v18, %v254_v17  ;;  %v413_v23 = vsel %vm409_vm14, %v397_v54, %v412_v1 }
  0x66   :  { %v417_v7 = vsel %vm409_vm14, %v400_v61, %v416_v5  ;;  %v576_v10 = vand.u32 3, %v575_v49  ;;  %1000 = vcosq.f32 %v257_v6  ;;  %v340_v8 = vclz %v946_v43 }
  0x67   :  { %v414_v30 = vsel %vm408_vm12, %v411_v0, %v413_v23  ;;  %v418_v42 = vsel %vm408_vm12, %v415_v3, %v417_v7  ;;  %1002 = vsinq.f32 %v257_v6  ;;  %v328_v59 = vadd.s32 %v1284_v56, %v1281_v48 }
  0x68   :  { %v419_v2 = vsel %vm407_vm10, %v397_v54, %v400_v61  ;;  %v420_v31 = vsel %vm410_vm15, %v406_v51, 1326507024  ;;  %v947_v20 = vadd.s32 4294967294, %v340_v8  ;;  %v430_v56 = vmul.u32 %v423_v14, %v414_v30 }
  0x69   :  { %v997_v15 = vpop.eup %996  ;;  %v421_v22 = vsel %vm409_vm14, %v403_v63, %v420_v31  ;;  %v1384_v24 = vmul.u32.u64.low %v423_v14, %v418_v42  ;;  %v1385_v12 = vmul.u32.u64.high %v423_v14, %v418_v42, %v1384_v24  ;;  %vm578_vm1 = vcmp.eq.s32.totalorder %v576_v10, 0 }
  0x6a   :  { %v999_v26 = vpop.eup %998  ;;  %v165_v4 = vxor.u32 2147483648, %v997_v15  ;;  %v422_v48 = vsel %vm408_vm12, %v419_v2, %v421_v22  ;;  %vm948_vm2 = vcmp.lt.s32.totalorder %v947_v20, 0  ;;  %vm577_vm3 = vcmp.lt.s32.totalorder %v576_v10, 2 }
  0x6b   :  { %v162_v27 = vxor.u32 2147483648, %v999_v26  ;;  %v1390_v32 = vmul.u32.u64.low %v423_v14, %v422_v48  ;;  %v1391_v33 = vmul.u32.u64.high %v423_v14, %v422_v48, %v1390_v32  ;;  %v343_v62 = vsel %vm948_vm2, 0, %v947_v20 }
  0x6c   :  { %v166_v29 = vsel %vm164_vm9, %v165_v4, %v999_v26  ;;  %vm581_vm4 = vcmp.eq.s32.totalorder %v576_v10, 2  ;;  %v344_v9 = vsub.s32 32, %v343_v62  ;;  %v345_v25 = vshll.u32 %v1341_v41, %v343_v62 }
  0x6d   :  { %v163_v34 = vsel %vm161_vm11, %v997_v15, %v162_v27  ;;  %v348_v40 = vsub.s32 4294967266, %v343_v62  ;;  %v433_v16 = vadd.s32 1, %v1385_v12  ;;  %v580_v38 = vsel %vm578_vm1, %v997_v15, %v162_v27 }
  0x6e   :  { %v167_v28 = vsel %vm160_vm13, %v163_v34, %v166_v29  ;;  %v583_v44 = vsel %vm581_vm4, %v165_v4, %v999_v26  ;;  %v346_v46 = vshrl.u32 %v328_v59, %v344_v9  ;;  %v262_v54 = vand.u32 3, %v1330_v37 }
  0x6f   :  { %v168_v47 = vsel %vm158_vm0, nan, %v167_v28  ;;  %v349_v52 = vadd.s32 127, %v348_v40  ;;  %vm432_vm5 = vc.u32 %v1391_v33, %v1384_v24  ;;  %v584_v55 = vsel %vm577_vm3, %v580_v38, %v583_v44 }
  0x70   :  { %478 = vst [vmem:[#allocation5] sm:$0xff] %v168_v47  ;;  %v680_v11 = vand.u32 3, %v679_v21  ;;  %v347_v57 = vor.u32 %v346_v46, %v345_v25  ;;  %v434_v45 = vsel %vm432_vm5, %v433_v16, %v1385_v12  ;;  %v585_v41 = vsel %vm158_vm0, nan, %v584_v55 }
  0x71   :  { %v350_v58 = vshll.u32 %v349_v52, 23  ;;  %v435_v49 = vadd.s32 %v434_v45, %v430_v56  ;;  %898 = vst [vmem:[#allocation6] sm:$0xff] %v585_v41  ;;  %vm261_vm6 = vweird.f32 %v1128_v18  ;;  %vm267_vm7 = vcmp.eq.s32.totalorder %v262_v54, 2 }
  0x72   :  { %v354_v63 = vcvt.s32.f32 %v347_v57  ;;  %vm685_vm8 = vcmp.eq.s32.totalorder %v680_v11, 2  ;;  %vm264_vm9 = vcmp.eq.s32.totalorder %v262_v54, 0  ;;  %vm682_vm10 = vcmp.eq.s32.totalorder %v680_v11, 0 }
  0x73   :  { %v351_v61 = vor.u32 4788187, %v350_v58  ;;  %v1001_v51 = vpop.eup %1000  ;;  %v436_v37 = vadd.s32 536870912, %v435_v49  ;;  %vm263_vm11 = vcmp.lt.s32.totalorder %v262_v54, 2  ;;  %vm681_vm12 = vcmp.lt.s32.totalorder %v680_v11, 2 }
  0x74   :  { %v1003_v53 = vpop.eup %1002  ;;  %v268_v60 = vxor.u32 2147483648, %v1001_v51  ;;  %vm274_vm13 = vcmp.lt.s32.totalorder %v1131_v19, 0  ;;  %v358_v14 = vsub.s32 4, %v1326_v36  ;;  %vm273_vm14 = vcmp.le.f32.partialorder %v272_v39, 0.7853982 }
  0x75   :  { %v352_v0 = vand.u32 2147483647, %v351_v61  ;;  %v265_v1 = vxor.u32 2147483648, %v1003_v53  ;;  %v1412_v3 = vshrl.u32 %v436_v37, 30  ;;  %v431_v26 = vadd.s32 %v1384_v24, %v1391_v33 }
  0x76   :  { %v269_v13 = vsel %vm267_vm7, %v268_v60, %v1003_v53  ;;  %v687_v17 = vsel %vm685_vm8, %v268_v60, %v1003_v53  ;;  %v359_v2 = vsel %vm274_vm13, %v358_v14, %v1326_v36  ;;  %vm377_vm7 = vcmp.lt.s32.totalorder %v1227_v35, 0 }
  0x77   :  { %v355_v5 = vmul.f32 %v354_v63, %v352_v0  ;;  %v266_v43 = vsel %vm264_vm9, %v1001_v51, %v265_v1  ;;  %v438_v21 = vshll.u32 %v1412_v3, 30  ;;  %v684_v6 = vsel %vm682_vm10, %v1001_v51, %v265_v1 }
  0x78   :  { %v270_v23 = vsel %vm263_vm11, %v266_v43, %v269_v13  ;;  %v688_v10 = vsel %vm681_vm12, %v684_v6, %v687_v17  ;;  %v361_v20 = vsel %vm273_vm14, 0, %v359_v2  ;;  %v461_v45 = vsub.s32 4, %v1412_v3 }
  0x79   :  { %v356_v7 = vxor.u32 2147483648, %v355_v5  ;;  %v271_v8 = vsel %vm261_vm6, nan, %v270_v23  ;;  %v439_v30 = vsub.s32 %v435_v49, %v438_v21  ;;  %v689_v42 = vsel %vm261_vm6, nan, %v688_v10 }
  0x7a   :  { %479 = vst [vmem:[#allocation5 + $0x8] sm:$0xff] %v271_v8  ;;  %899 = vst [vmem:[#allocation6 + $0x8] sm:$0xff] %v689_v42  ;;  %v783_v18 = vadd.s32 3, %v361_v20  ;;  %v365_v4 = vand.u32 3, %v361_v20  ;;  %vm364_vm6 = vweird.f32 %v1131_v19  ;;  %vm376_vm8 = vcmp.le.f32.partialorder %v375_v50, 0.7853982 }
  0x7b   :  { %v357_v59 = vsel %vm274_vm13, %v356_v7, %v355_v5  ;;  %v441_v31 = vsub.s32 0, %v439_v30  ;;  %v462_v49 = vsel %vm377_vm7, %v461_v45, %v1412_v3 }
  0x7c   :  { %v360_v39 = vsel %vm273_vm14, %v1131_v19, %v357_v59  ;;  %v784_v36 = vand.u32 3, %v783_v18  ;;  %vm370_vm0 = vcmp.eq.s32.totalorder %v365_v4, 2  ;;  %vm366_vm2 = vcmp.lt.s32.totalorder %v365_v4, 2 }
  0x7d   :  { %1004 = vcosq.f32 %v360_v39  ;;  %v950_v15 = vmin.u32 %v441_v31, %v439_v30  ;;  %vm367_vm3 = vcmp.eq.s32.totalorder %v365_v4, 0  ;;  %v464_v63 = vsel %vm376_vm8, 0, %v462_v49 }
  0x7e   :  { %1006 = vsinq.f32 %v360_v39  ;;  %vm789_vm1 = vcmp.eq.s32.totalorder %v784_v36, 2  ;;  %vm786_vm4 = vcmp.eq.s32.totalorder %v784_v36, 0  ;;  %vm785_vm5 = vcmp.lt.s32.totalorder %v784_v36, 2 }
  0x7f   :  { %v443_v22 = vclz %v950_v15  ;;  %v887_v51 = vadd.s32 3, %v464_v63  ;;  %v468_v37 = vand.u32 3, %v464_v63 }
  0x81   :  { %v951_v12 = vadd.s32 4294967294, %v443_v22  ;;  %v888_v53 = vand.u32 3, %v887_v51  ;;  %vm473_vm9 = vcmp.eq.s32.totalorder %v468_v37, 2  ;;  %vm470_vm11 = vcmp.eq.s32.totalorder %v468_v37, 0 }
  0x82   :  { %vm469_vm13 = vcmp.lt.s32.totalorder %v468_v37, 2 }
  0x83   :  { %vm952_vm15 = vcmp.lt.s32.totalorder %v951_v12, 0  ;;  %vm893_vm10 = vcmp.eq.s32.totalorder %v888_v53, 2  ;;  %vm890_vm12 = vcmp.eq.s32.totalorder %v888_v53, 0  ;;  %vm889_vm14 = vcmp.lt.s32.totalorder %v888_v53, 2 }
  0x84   :  { %v446_v48 = vsel %vm952_vm15, 0, %v951_v12  ;;  %vm467_vm15 = vweird.f32 %v1227_v35 }
  0x85   :  { %v447_v56 = vsub.s32 32, %v446_v48  ;;  %v448_v27 = vshll.u32 %v439_v30, %v446_v48  ;;  %v451_v32 = vsub.s32 4294967266, %v446_v48 }
  0x87   :  { %v449_v29 = vshrl.u32 %v431_v26, %v447_v56  ;;  %v452_v62 = vadd.s32 127, %v451_v32 }
  0x89   :  { %v450_v9 = vor.u32 %v449_v29, %v448_v27  ;;  %v453_v25 = vshll.u32 %v452_v62, 23 }
  0x8a   :  { %v1005_v34 = vpop.eup %1004 }
  0x8b   :  { %v1007_v40 = vpop.eup %1006  ;;  %v371_v28 = vxor.u32 2147483648, %v1005_v34  ;;  %v454_v33 = vor.u32 4788187, %v453_v25  ;;  %v457_v16 = vcvt.s32.f32 %v450_v9 }
  0x8c   :  { %v368_v24 = vxor.u32 2147483648, %v1007_v40 }
  0x8d   :  { %v372_v38 = vsel %vm370_vm0, %v371_v28, %v1007_v40  ;;  %v791_v44 = vsel %vm789_vm1, %v371_v28, %v1007_v40  ;;  %v455_v46 = vand.u32 2147483647, %v454_v33 }
  0x8e   :  { %v369_v47 = vsel %vm367_vm3, %v1005_v34, %v368_v24  ;;  %v788_v52 = vsel %vm786_vm4, %v1005_v34, %v368_v24 }
  0x8f   :  { %v373_v54 = vsel %vm366_vm2, %v369_v47, %v372_v38  ;;  %v792_v55 = vsel %vm785_vm5, %v788_v52, %v791_v44  ;;  %v458_v57 = vmul.f32 %v457_v16, %v455_v46 }
  0x90   :  { %v374_v11 = vsel %vm364_vm6, nan, %v373_v54  ;;  %v793_v58 = vsel %vm364_vm6, nan, %v792_v55 }
  0x91   :  { %480 = vst [vmem:[#allocation5 + $0x10] sm:$0xff] %v374_v11  ;;  %900 = vst [vmem:[#allocation6 + $0x10] sm:$0xff] %v793_v58  ;;  %v459_v19 = vxor.u32 2147483648, %v458_v57 }
  0x93   :  { %v460_v41 = vsel %vm377_vm7, %v459_v19, %v458_v57 }
  0x94   :  { %v463_v61 = vsel %vm376_vm8, %v1227_v35, %v460_v41 }
  0x95   :  { %1008 = vcosq.f32 %v463_v61 }
  0x96   :  { %1010 = vsinq.f32 %v463_v61 }
  0xa2   :  { %v1009_v60 = vpop.eup %1008 }
  0xa3   :  { %v1011_v0 = vpop.eup %1010  ;;  %v474_v1 = vxor.u32 2147483648, %v1009_v60 }
  0xa4   :  { %v471_v50 = vxor.u32 2147483648, %v1011_v0 }
  0xa5   :  { %v475_v3 = vsel %vm473_vm9, %v474_v1, %v1011_v0  ;;  %v895_v13 = vsel %vm893_vm10, %v474_v1, %v1011_v0 }
  0xa6   :  { %v472_v5 = vsel %vm470_vm11, %v1009_v60, %v471_v50  ;;  %v892_v17 = vsel %vm890_vm12, %v1009_v60, %v471_v50 }
  0xa7   :  { %v476_v43 = vsel %vm469_vm13, %v472_v5, %v475_v3  ;;  %v896_v14 = vsel %vm889_vm14, %v892_v17, %v895_v13 }
  0xa8   :  { %v477_v21 = vsel %vm467_vm15, nan, %v476_v43  ;;  %v897_v6 = vsel %vm467_vm15, nan, %v896_v14 }
  0xa9   :  { %481 = vst [vmem:[#allocation5 + $0x18] sm:$0xff] %v477_v21  ;;  %901 = vst [vmem:[#allocation6 + $0x18] sm:$0xff] %v897_v6 }
  0xaa   :  { %1043 = shalt.err (!%p1040_p9)
}
  0xab   :  { %s1087_s23 = smov 128   ;;  %s1088_s24 = smov 8  }
  0xac   :  { %913 = dma.vmem_to_hbm [thread:$0]  %s908_s1, 512, %s1447_s2, [#allocation4], %s1087_s23, %s1087_s23, %s1088_s24  }
  0xad   :  { %s1052_s27 = scalar_lea.vmem %s920_s21, 512  ;;  %p1057_p11 = scmp.lt.s32.totalorder %s920_s21, %s920_s21 }
  0xae   :  { %p1053_p10 = scmp.ne.s32.totalorder %s920_s21, %s1052_s27  ;;  %p1058_p12 = scmp.lt.s32.totalorder %s1052_s27, %s1052_s27 }
  0xb0   :  { %p1059_p13 = por %p1058_p12, %p1057_p11 }
  0xb2   :  { %p1060_p0 = pnand %p1059_p13, %p1053_p10 }
  0xb4   :  { %1063 = shalt.err (!%p1060_p0)
}
  0xb5   :  { %925 = dma.vmem_to_hbm [thread:$0]  %s920_s21, 512, %s1448_s3, [#allocation7], %s1087_s23, %s1087_s23, %s1088_s24  }
  0xb6   :  { %1074 = dma.done.wait [#allocation4], 512  }
  0xb7   :  { %1075 = vsyncadd [#allocation4], 4294966784 }
  0xb8   :  { %1076 = dma.done.wait [#allocation7], 512  }
  0xb9   :  { %1077 = vsyncadd [#allocation7], 4294966784 }
  0xba   :  { %932 = vsyncpa [#allocation3], 1 }
  0xbb   :  { %933 = vsyncpa [#allocation4], 1 }
  0xbc   :  { %934 = vsyncpa [#allocation7], 1 }

</bundles_post_ra>
